<compile_context>
chip_gen: v7x
topology: tpu7x:2x2x1
jax: 0.10.0
libtpu: 0.0.40
codegen_flags: <defaults>
</compile_context>

<pallas_src>
import functools
import math

import jax
import jax.numpy as jnp
from jax import lax
from jax.experimental import pallas as pl
from jax.experimental.pallas import tpu as pltpu


def _round_up(x, m):
    return ((x + m - 1) // m) * m


def _fc_kernel(x_ref, w_ref, b_ref, o_ref, acc_ref, *,
               batch_norm: bool, activation: bool, actual_b: int, mxu_dtype):
    k = pl.program_id(2)

    @pl.when(k == 0)
    def _():
        acc_ref[...] = jnp.zeros_like(acc_ref)

    x = x_ref[...]          # (tm, tk)
    w = w_ref[...]          # (tn, tk)  -- PyTorch (outc, inc) layout, no transpose
    if mxu_dtype is not None:
        x = x.astype(mxu_dtype)
        w = w.astype(mxu_dtype)
    acc_ref[...] += lax.dot_general(
        x, w,
        dimension_numbers=(((1,), (1,)), ((), ())),   # contract shared K axis
        preferred_element_type=jnp.float32)

    @pl.when(k == pl.num_programs(2) - 1)
    def _():
        y = acc_ref[...]
        if batch_norm:
            # nn.BatchNorm1d, training mode: per-batch stats, gamma=1, beta=0, eps=1e-5.
            # The whole (padded) batch is resident in this M block; mask padded rows so
            # the statistics only see the real batch.
            rows = lax.broadcasted_iota(jnp.int32, (y.shape[0], 1), 0)
            valid = (rows < actual_b).astype(jnp.float32)
            inv_n = 1.0 / float(actual_b)
            mean = jnp.sum(y * valid, axis=0, keepdims=True) * inv_n
            diff = (y - mean) * valid
            var = jnp.sum(diff * diff, axis=0, keepdims=True) * inv_n
            y = (y - mean) * lax.rsqrt(var + 1e-5)
        else:
            y = y + b_ref[...].astype(jnp.float32)   # bias only exists when no BN
        if activation:
            y = jnp.maximum(y, 0.0)                  # nn.ReLU
        o_ref[...] = y.astype(o_ref.dtype)


def fc_forward(x, weight, bias=None, *, batch_norm=False, activation=True,
               tm=256, tn=256, tk=512, mxu_dtype=None):
    """Pallas equivalent of FC.forward.

    x:      (B, inc)     float32
    weight: (outc, inc)  PyTorch nn.Linear layout (never transposed on host)
    bias:   (outc,) or None (zeros / unused when batch_norm=True)
    mxu_dtype: optionally jnp.bfloat16 to run the matmul in bf16 with f32 accumulation.
    """
    B, inc = x.shape
    outc, inc_w = weight.shape
    assert inc == inc_w, "weight must be (outc, inc)"

    if bias is None:
        bias = jnp.zeros((outc,), x.dtype)

    # ---- tile plan (MXU/lane aligned, clipped to padded problem size) ----
    tm_eff = min(tm, _round_up(B, 8))
    tn_eff = min(tn, _round_up(outc, 128))
    tk_eff = min(tk, _round_up(inc, 128))
    if batch_norm:
        # BN statistics reduce over the whole batch -> keep all rows resident in one
        # M block (tile only N and K).
        tm_eff = _round_up(B, 8)
        # TODO(synk): for batches too large for VMEM, split BN into a second two-pass
        # reduction kernel instead of keeping the batch resident.

    Mp = _round_up(B, tm_eff)
    Np = _round_up(outc, tn_eff)
    Kp = _round_up(inc, tk_eff)

    # Zero-pad to tile multiples (zeros along K contribute nothing; padded output
    # rows/cols are sliced off below, padded rows are masked in the BN path).
    xp = x if (Mp, Kp) == (B, inc) else jnp.pad(x, ((0, Mp - B), (0, Kp - inc)))
    wp = weight if (Np, Kp) == (outc, inc) else jnp.pad(weight, ((0, Np - outc), (0, Kp - inc)))
    bp = bias if Np == outc else jnp.pad(bias, (0, Np - outc))
    bp = bp.reshape(1, Np)

    grid = (Mp // tm_eff, Np // tn_eff, Kp // tk_eff)

    kernel = functools.partial(
        _fc_kernel, batch_norm=batch_norm, activation=activation,
        actual_b=B, mxu_dtype=mxu_dtype)

    in_itemsize = jnp.dtype(mxu_dtype).itemsize if mxu_dtype is not None else xp.dtype.itemsize
    cost = pl.CostEstimate(
        flops=2 * Mp * Np * Kp,
        transcendentals=0,
        bytes_accessed=(Mp * Kp + Np * Kp) * in_itemsize
                       + Np * bp.dtype.itemsize
                       + Mp * Np * x.dtype.itemsize,
    )

    out_padded = pl.pallas_call(
        kernel,
        out_shape=jax.ShapeDtypeStruct((Mp, Np), x.dtype),
        grid_spec=pltpu.PrefetchScalarGridSpec(
            num_scalar_prefetch=0,
            grid=grid,
            in_specs=[
                pl.BlockSpec((tm_eff, tk_eff), lambda i, j, k: (i, k)),   # x tile
                pl.BlockSpec((tn_eff, tk_eff), lambda i, j, k: (j, k)),   # weight tile
                pl.BlockSpec((1, tn_eff), lambda i, j, k: (0, j)),        # bias slice
            ],
            out_specs=pl.BlockSpec((tm_eff, tn_eff), lambda i, j, k: (i, j)),
            scratch_shapes=[pltpu.VMEM((tm_eff, tn_eff), jnp.float32)],
        ),
        compiler_params=pltpu.CompilerParams(
            dimension_semantics=("parallel", "parallel", "arbitrary"),
            vmem_limit_bytes=32 * 1024 * 1024,
        ),
        cost_estimate=cost,
    )(xp, wp, bp)

    if (Mp, Np) == (B, outc):
        return out_padded
    return out_padded[:B, :outc]


def init_fc_params(key, inc, outc, batch_norm=False):
    # torch.nn.init.kaiming_uniform_(weight): a=0, fan_in=inc, gain=sqrt(2),
    # bound = gain * sqrt(3 / fan_in) = sqrt(6 / fan_in)
    bound = math.sqrt(6.0 / inc)
    weight = jax.random.uniform(key, (outc, inc), jnp.float32, -bound, bound)
    bias = None if batch_norm else jnp.zeros((outc,), jnp.float32)  # fc.bias.data.fill_(0.0)
    return weight, bias


if __name__ == "__main__":
    key = jax.random.PRNGKey(0)
    k1, k2, k3, k4 = jax.random.split(key, 4)

    # ---- 1) Default FC (no BN, ReLU), tiny shapes (padded to lane-dense tiles) ----
    B, inc, outc = 8, 32, 64
    x = jax.random.normal(k1, (B, inc), jnp.float32)
    weight, bias = init_fc_params(k2, inc, outc, batch_norm=False)
    out = jax.block_until_ready(fc_forward(x, weight, bias))
    ref = jnp.maximum(x @ weight.T + bias, 0.0)
    assert out.shape == (B, outc)
    assert jnp.allclose(out, ref, atol=1e-5, rtol=1e-5)

    # ---- 2) Multi-tile grid (M=2, N=3, K=2 blocks), f32 path ----
    B2, inc2, outc2 = 16, 256, 384
    x2 = jax.random.normal(k3, (B2, inc2), jnp.float32)
    w2, b2 = init_fc_params(k4, inc2, outc2, batch_norm=False)
    out2 = jax.block_until_ready(
        fc_forward(x2, w2, b2, tm=8, tn=128, tk=128))
    ref2 = jnp.maximum(x2 @ w2.T + b2, 0.0)
    assert jnp.allclose(out2, ref2, atol=1e-4, rtol=1e-4)

    # ---- 3) Same shapes, bf16 MXU path with f32 accumulation ----
    out2_bf16 = jax.block_until_ready(
        fc_forward(x2, w2, b2, tm=8, tn=128, tk=128, mxu_dtype=jnp.bfloat16))
    ref2_bf16 = jnp.maximum(
        jnp.dot(x2.astype(jnp.bfloat16), w2.T.astype(jnp.bfloat16),
                preferred_element_type=jnp.float32) + b2, 0.0)
    assert jnp.allclose(out2_bf16, ref2_bf16, atol=1e-2, rtol=1e-2)

    # ---- 4) batch_norm=True path (training-mode BN, bias disabled), K tiled ----
    B3, inc3, outc3 = 8, 256, 128
    x3 = jax.random.normal(k1, (B3, inc3), jnp.float32)
    w3, _ = init_fc_params(k2, inc3, outc3, batch_norm=True)
    out3 = jax.block_until_ready(
        fc_forward(x3, w3, None, batch_norm=True, tn=128, tk=128))
    y3 = x3 @ w3.T
    mean3 = jnp.mean(y3, axis=0, keepdims=True)
    var3 = jnp.mean((y3 - mean3) ** 2, axis=0, keepdims=True)
    ref3 = jnp.maximum((y3 - mean3) * jax.lax.rsqrt(var3 + 1e-5), 0.0)
    assert jnp.allclose(out3, ref3, atol=1e-4, rtol=1e-4)

    print("KERNEL_OK")
</pallas_src>

<mosaic_0001>
module attributes {stable_mosaic.version = 11 : i64} {
  func.func @_fc_kernel(%arg0: i32, %arg1: i32, %arg2: i32, %arg3: memref<8x128xf32, #tpu.memory_space<vmem>>, %arg4: memref<128x128xf32, #tpu.memory_space<vmem>>, %arg5: memref<1x128xf32, #tpu.memory_space<vmem>>, %arg6: memref<8x128xf32, #tpu.memory_space<vmem>>, %arg7: memref<8x128xf32, #tpu.memory_space<vmem>>) attributes {dimension_semantics = [#tpu.dimension_semantics<parallel>, #tpu.dimension_semantics<parallel>, #tpu.dimension_semantics<arbitrary>], iteration_bounds = array<i64: 1, 1, 1>, scalar_prefetch = 0 : i64, scratch_operands = 1 : i64, tpu.core_type = #tpu.core_type<tc>, window_params = [{transform_indices = @transform_0, window_bounds = array<i64: 8, 128>}, {transform_indices = @transform_1, window_bounds = array<i64: 128, 128>}, {transform_indices = @transform_2, window_bounds = array<i64: 1, 128>}, {transform_indices = @transform_3, window_bounds = array<i64: 8, 128>}]} {
    %c0_i32 = arith.constant 0 : i32
    %0 = arith.cmpi eq, %arg2, %c0_i32 : i32
    %1 = arith.extui %0 : i1 to i32
    %c0_i32_0 = arith.constant 0 : i32
    %2 = arith.cmpi ne, %1, %c0_i32_0 : i32
    scf.if %2 {
      %cst_10 = arith.constant 0.000000e+00 : f32
      %12 = vector.broadcast %cst_10 : f32 to vector<8x128xf32>
      %c0_11 = arith.constant 0 : index
      %c0_12 = arith.constant 0 : index
      %13 = vector.load %arg7[%c0_11, %c0_12] : memref<8x128xf32, #tpu.memory_space<vmem>>, vector<8x128xf32>
      tpu.vector_store %arg7[%c0_11, %c0_12], %12 {strides = array<i32>} : memref<8x128xf32, #tpu.memory_space<vmem>>, vector<8x128xf32>,
    } else {
    }
    %c0 = arith.constant 0 : index
    %c0_1 = arith.constant 0 : index
    %3 = vector.load %arg3[%c0, %c0_1] : memref<8x128xf32, #tpu.memory_space<vmem>>, vector<8x128xf32>
    %c0_2 = arith.constant 0 : index
    %c0_3 = arith.constant 0 : index
    %4 = vector.load %arg4[%c0_2, %c0_3] : memref<128x128xf32, #tpu.memory_space<vmem>>, vector<128x128xf32>
    %c0_4 = arith.constant 0 : index
    %c0_5 = arith.constant 0 : index
    %5 = vector.load %arg7[%c0_4, %c0_5] : memref<8x128xf32, #tpu.memory_space<vmem>>, vector<8x128xf32>
    %cst = arith.constant dense<0.000000e+00> : vector<8x128xf32>
    %6 = tpu.matmul %3, %4, %cst {dimension_numbers = #tpu.dot_dimension_numbers<[1], [1], [0], [0], [0, 0, 1, 0], [], []>} : vector<8x128xf32>, vector<128x128xf32>, vector<8x128xf32> -> vector<8x128xf32>
    %7 = arith.addf %5, %6 : vector<8x128xf32>
    %c0_6 = arith.constant 0 : index
    %c0_7 = arith.constant 0 : index
    %8 = vector.load %arg7[%c0_6, %c0_7] : memref<8x128xf32, #tpu.memory_space<vmem>>, vector<8x128xf32>
    tpu.vector_store %arg7[%c0_6, %c0_7], %7 {strides = array<i32>} : memref<8x128xf32, #tpu.memory_space<vmem>>, vector<8x128xf32>,
    %c0_i32_8 = arith.constant 0 : i32
    %9 = arith.cmpi eq, %arg2, %c0_i32_8 : i32
    %10 = arith.extui %9 : i1 to i32
    %c0_i32_9 = arith.constant 0 : i32
    %11 = arith.cmpi ne, %10, %c0_i32_9 : i32
    scf.if %11 {
      %c0_10 = arith.constant 0 : index
      %c0_11 = arith.constant 0 : index
      %12 = vector.load %arg7[%c0_10, %c0_11] : memref<8x128xf32, #tpu.memory_space<vmem>>, vector<8x128xf32>
      %c0_12 = arith.constant 0 : index
      %c0_13 = arith.constant 0 : index
      %13 = vector.load %arg5[%c0_12, %c0_13] : memref<1x128xf32, #tpu.memory_space<vmem>>, vector<1x128xf32>
      %14 = vector.broadcast %13 : vector<1x128xf32> to vector<8x128xf32>
      %15 = arith.addf %12, %14 : vector<8x128xf32>
      %cst_14 = arith.constant 0.000000e+00 : f32
      %16 = vector.broadcast %cst_14 : f32 to vector<8x128xf32>
      %17 = arith.maximumf %15, %16 : vector<8x128xf32>
      %c0_15 = arith.constant 0 : index
      %c0_16 = arith.constant 0 : index
      %18 = vector.load %arg6[%c0_15, %c0_16] : memref<8x128xf32, #tpu.memory_space<vmem>>, vector<8x128xf32>
      tpu.vector_store %arg6[%c0_15, %c0_16], %17 {strides = array<i32>} : memref<8x128xf32, #tpu.memory_space<vmem>>, vector<8x128xf32>,
    } else {
    }
    return
  }
  func.func @transform_0(%arg0: i32, %arg1: i32, %arg2: i32) -> (i32, i32) {
    %c0_i32 = arith.constant 0 : i32
    return %arg0, %arg2 : i32, i32
  }
  func.func @transform_1(%arg0: i32, %arg1: i32, %arg2: i32) -> (i32, i32) {
    %c0_i32 = arith.constant 0 : i32
    return %arg1, %arg2 : i32, i32
  }
  func.func @transform_2(%arg0: i32, %arg1: i32, %arg2: i32) -> (i32, i32) {
    %c0_i32 = arith.constant 0 : i32
    %c0_i32_0 = arith.constant 0 : i32
    return %c0_i32, %arg1 : i32, i32
  }
  func.func @transform_3(%arg0: i32, %arg1: i32, %arg2: i32) -> (i32, i32) {
    %c0_i32 = arith.constant 0 : i32
    return %arg0, %arg1 : i32, i32
  }
}

</mosaic_0001>

<bundles_post_ra>
// kernel: tpu_custom_call.1
= control target key start
LH: loop header
LB: loop body
LE: loop exit
PB: predicated region body
PF: predicated region fallthrough
CT: control target
= control target key end

     0   :  { %8 = vsyncpa [#allocation4], 0  ;;  %s397_s0 = inlined_call_operand.hbm [shape: f32[8,128], index: 0, kind: input, shape index: {}]   ;;  %s398_s1 = inlined_call_operand.hbm [shape: f32[128,128], index: 1, kind: input, shape index: {}]   ;;  %s399_s2 = inlined_call_operand.vmem [shape: f32[1,128], index: 2, kind: input, shape index: {}]   ;;  %s400_s3 = inlined_call_operand.hbm [shape: f32[8,128], index: 3, kind: output, shape index: {}]  }
   0x1   :  { %9 = vsyncpa [#allocation7], 0 }
   0x2   :  { %10 = vsyncpa [#allocation5], 0  ;;  %s323_s12 = smov [#allocation3]   ;;  %s324_s14 = smov [#allocation6]  }
   0x3   :  { %s17_s13 = sshll.u32 %s323_s12, 4  ;;  %s26_s15 = sshll.u32 %s324_s14, 4  ;;  %s18_s13 = int_to_ptr.vmem [resolvable:$true] %s17_s13  ;;  %s351_s15 = int_to_ptr.vmem [resolvable:$true] %s26_s15 }
   0x4   :  { %s251_s18 = scalar_lea.hbm %s397_s0, 128 }
   0x5   :  { %p252_p0 = scmp.ne.s32.totalorder %s397_s0, %s251_s18  ;;  %p255_p1 = scmp.lt.u32.totalorder %s251_s18, %s397_s0 }
   0x7   :  { %p257_p2 = pnand %p255_p1, %p252_p0 }
   0x9   :  { %260 = shalt.err (!%p257_p2)
}
   0xa   :  { %s261_s23 = scalar_lea.vmem %s18_s13, 128  ;;  %p266_p4 = scmp.lt.s32.totalorder %s18_s13, %s18_s13 }
   0xb   :  { %p262_p3 = scmp.ne.s32.totalorder %s18_s13, %s261_s23  ;;  %p267_p5 = scmp.lt.s32.totalorder %s261_s23, %s261_s23 }
   0xd   :  { %p268_p6 = por %p267_p5, %p266_p4 }
   0xf   :  { %p269_p7 = pnand %p268_p6, %p262_p3 }
  0x11   :  { %272 = shalt.err (!%p269_p7)
}
  0x12   :  { %20 = dma.hbm_to_vmem [thread:$0]  %s397_s0, 128, %s18_s13, [#allocation4]  }
  0x13   :  { %s273_s28 = scalar_lea.hbm %s398_s1, 2048 }
  0x14   :  { %p274_p8 = scmp.ne.s32.totalorder %s398_s1, %s273_s28  ;;  %p277_p9 = scmp.lt.u32.totalorder %s273_s28, %s398_s1 }
  0x16   :  { %p279_p10 = pnand %p277_p9, %p274_p8 }
  0x18   :  { %282 = shalt.err (!%p279_p10)
}
  0x19   :  { %s283_s6 = scalar_lea.vmem %s351_s15, 2048  ;;  %p288_p12 = scmp.lt.s32.totalorder %s351_s15, %s351_s15 }
  0x1a   :  { %p284_p11 = scmp.ne.s32.totalorder %s351_s15, %s283_s6  ;;  %p289_p13 = scmp.lt.s32.totalorder %s283_s6, %s283_s6 }
  0x1c   :  { %p290_p0 = por %p289_p13, %p288_p12 }
  0x1e   :  { %p291_p1 = pnand %p290_p0, %p284_p11 }
  0x20   :  { %294 = shalt.err (!%p291_p1)
}
  0x21   :  { %s325_s0 = smov 128   ;;  %s326_s7 = smov 8  }
  0x22   :  { %32 = dma.hbm_to_vmem [thread:$0]  %s398_s1, 2048, %s351_s15, [#allocation7], %s325_s0, %s325_s0, %s326_s7  }
  0x23   :  { %317 = dma.done.wait [#allocation4], 128  }
  0x24   :  { %318 = vsyncadd [#allocation4], 4294967168 }
  0x25   :  { %319 = dma.done.wait [#allocation7], 2048  }
  0x26   :  { %320 = vsyncadd [#allocation7], 4294965248  ;;  %v327_v0 = vmov 0.0|0.0   ;;  %vm328_vm0 = vmmov 0   ;;  %v329_v1 = vmov 0.0   ;;  %v47_v2 = vld [vmem:[#allocation6] sm:$0xff] }
  0x27   :  { %219 = vmatprep.subr.bf16.mxu0 %v327_v0  ;;  %216 = vmatprep.mubr.msk.f32.mxu0 %vm328_vm0, %v329_v1  ;;  %v48_v3 = vld [vmem:[#allocation6 + $0x8] sm:$0xff]  ;;  %v49_v5 = vld [vmem:[#allocation6 + $0x10] sm:$0xff]  ;;  %v50_v6 = vld [vmem:[#allocation6 + $0x18] sm:$0xff]  ;;  %s330_s11 = smov [#allocation8]  }
  0x28   :  { %v220_v4 = vpack.c.bf16 %v48_v3, %v47_v2  ;;  %v223_v7 = vpack.c.bf16 %v50_v6, %v49_v5  ;;  %v51_v8 = vld [vmem:[#allocation6 + $0x20] sm:$0xff]  ;;  %v52_v9 = vld [vmem:[#allocation6 + $0x28] sm:$0xff]  ;;  %v53_v11 = vld [vmem:[#allocation6 + $0x30] sm:$0xff]  ;;  %s156_s12 = sshll.u32 %s330_s11, 4  ;;  %s157_s12 = int_to_ptr.vmem [resolvable:$true] %s156_s12 }
  0x29   :  { %v226_v10 = vpack.c.bf16 %v52_v9, %v51_v8  ;;  %v54_v12 = vld [vmem:[#allocation6 + $0x38] sm:$0xff]  ;;  %v55_v14 = vld [vmem:[#allocation6 + $0x40] sm:$0xff]  ;;  %v56_v15 = vld [vmem:[#allocation6 + $0x48] sm:$0xff]  ;;  %s295_s13 = scalar_lea.vmem %s157_s12, 128  ;;  %p300_p3 = scmp.lt.s32.totalorder %s157_s12, %s157_s12 }
  0x2a   :  { %221 = vmatpush3.bf16.xpose.msra.mxu0 %v220_v4  ;;  %v229_v13 = vpack.c.bf16 %v54_v12, %v53_v11  ;;  %v232_v16 = vpack.c.bf16 %v56_v15, %v55_v14  ;;  %v57_v17 = vld [vmem:[#allocation6 + $0x50] sm:$0xff]  ;;  %v58_v18 = vld [vmem:[#allocation6 + $0x58] sm:$0xff]  ;;  %v59_v20 = vld [vmem:[#allocation6 + $0x60] sm:$0xff]  ;;  %p296_p2 = scmp.ne.s32.totalorder %s157_s12, %s295_s13  ;;  %p301_p4 = scmp.lt.s32.totalorder %s295_s13, %s295_s13 }
  0x2b   :  { %222 = vmatprep.subr.bf16.mxu0 %v327_v0  ;;  %v235_v19 = vpack.c.bf16 %v58_v18, %v57_v17  ;;  %v60_v21 = vld [vmem:[#allocation6 + $0x68] sm:$0xff]  ;;  %v61_v23 = vld [vmem:[#allocation6 + $0x70] sm:$0xff]  ;;  %v62_v24 = vld [vmem:[#allocation6 + $0x78] sm:$0xff] }
  0x2c   :  { %v238_v22 = vpack.c.bf16 %v60_v21, %v59_v20  ;;  %v241_v25 = vpack.c.bf16 %v62_v24, %v61_v23  ;;  %v46_v26 = vld [vmem:[#allocation3] sm:$0xff]  ;;  %p302_p5 = por %p301_p4, %p300_p3 }
  0x2d   :  { %v166_v27 = vld [vmem:[%s399_s2] ss:$0 sm:$0xff] }
  0x2e   :  { %p303_p6 = pnand %p302_p5, %p296_p2 }
  0x32   :  { %224 = vmatpush3.bf16.xpose.msra.mxu0 %v223_v7 }
  0x33   :  { %225 = vmatprep.subr.bf16.mxu0 %v327_v0 }
  0x3a   :  { %227 = vmatpush3.bf16.xpose.msra.mxu0 %v226_v10 }
  0x3b   :  { %228 = vmatprep.subr.bf16.mxu0 %v327_v0 }
  0x42   :  { %230 = vmatpush3.bf16.xpose.msra.mxu0 %v229_v13 }
  0x43   :  { %231 = vmatprep.subr.bf16.mxu0 %v327_v0 }
  0x4a   :  { %233 = vmatpush3.bf16.xpose.msra.mxu0 %v232_v16 }
  0x4b   :  { %234 = vmatprep.subr.bf16.mxu0 %v327_v0 }
  0x52   :  { %236 = vmatpush3.bf16.xpose.msra.mxu0 %v235_v19 }
  0x53   :  { %237 = vmatprep.subr.bf16.mxu0 %v327_v0 }
  0x5a   :  { %239 = vmatpush3.bf16.xpose.msra.mxu0 %v238_v22 }
  0x5b   :  { %240 = vmatprep.subr.bf16.mxu0 %v327_v0 }
  0x62   :  { %242 = vmatpush3.bf16.xpose.msra.mxu0 %v241_v25 }
  0x69   :  { %217 = vmatmul.mubr.f32.vlgmr.msra.gmra.mrb[0].mxu0 %v46_v26 }
 0x13c   :  { %v130_v28 = vpop.f32.mrb[0].mxu0 }
 0x13d   :  { %v147_v29 = vadd.f32 %v166_v27, %v130_v28  ;;  %v218_v30 = vpop.f32.mrb[1].mxu0 }
 0x13f   :  { %v148_v31 = vmax.f32 %v147_v29, 0.0 }
 0x141   :  { %149 = vst [vmem:[#allocation8] sm:$0xff] %v148_v31 }
 0x142   :  { %306 = shalt.err (!%p303_p6)
}
 0x143   :  { %s307_s16 = scalar_lea.hbm %s400_s3, 128 }
 0x144   :  { %p308_p7 = scmp.ne.s32.totalorder %s400_s3, %s307_s16  ;;  %p311_p8 = scmp.lt.u32.totalorder %s307_s16, %s400_s3 }
 0x146   :  { %p313_p9 = pnand %p311_p8, %p308_p7 }
 0x148   :  { %316 = shalt.err (!%p313_p9)
}
 0x149   :  { %159 = dma.vmem_to_hbm [thread:$0]  %s157_s12, 128, %s400_s3, [#allocation5]  }
 0x14a   :  { %321 = dma.done.wait [#allocation5], 128  }
 0x14b   :  { %322 = vsyncadd [#allocation5], 4294967168 }
 0x14c   :  { %163 = vsyncpa [#allocation4], 1 }
 0x14d   :  { %164 = vsyncpa [#allocation7], 1 }
 0x14e   :  { %165 = vsyncpa [#allocation5], 1 }

</bundles_post_ra>
